<compile_context>
chip_gen: v7x
topology: tpu7x:2x2x1
jax: 0.10.0
libtpu: 0.0.40
codegen_flags: <defaults>
</compile_context>

<pallas_src>
import functools

import jax
import jax.numpy as jnp
import numpy as np
from jax.experimental import pallas as pl
from jax.experimental.pallas import tpu as pltpu


def _noop_forward_kernel(x_ref, o_ref, flag_ref):
    # Abstract Layer.forward: no transformation.  x_ref / o_ref are raw HBM
    # refs (memory_space=pl.ANY) and the output already aliases the input, so
    # we intentionally never touch them -> zero HBM and zero VMEM traffic.
    del x_ref, o_ref
    # Single scalar SMEM store: keeps the Mosaic body non-empty at negligible
    # cost (one sst; no vector units, no DMA).
    flag_ref[0] = jnp.int32(1)


def _noop_pallas(x: jax.Array) -> jax.Array:
    return pl.pallas_call(
        _noop_forward_kernel,
        out_shape=jax.ShapeDtypeStruct(x.shape, x.dtype),
        # Leave both arrays in place (HBM); no BlockSpec tiling -> no auto-DMA.
        in_specs=[pl.BlockSpec(memory_space=pl.ANY)],
        out_specs=pl.BlockSpec(memory_space=pl.ANY),
        scratch_shapes=[pltpu.SMEM((1,), jnp.int32)],
        # Output aliases the input: no fresh HBM allocation, no copy.
        input_output_aliases={0: 0},
    )(x)


@functools.partial(jax.jit, donate_argnums=(0,))
def layer_forward(x: jax.Array) -> jax.Array:
    """Pallas 'forward' for the abstract Layer: no-op on x (zero data movement).

    NOTE: x is donated -- callers must not reuse the input buffer afterwards.
    """
    if x.size == 0 or x.ndim == 0:
        # Degenerate shapes: nothing to do, skip the kernel launch entirely.
        return x
    return _noop_pallas(x)


if __name__ == "__main__":
    key = jax.random.PRNGKey(0)
    # Small NCHW example input consistent with typical Layer subclasses.
    x = jax.random.normal(key, (2, 4, 16, 16), dtype=jnp.float32)
    x_host = np.asarray(x)  # snapshot: x's buffer is donated to layer_forward

    y = layer_forward(x)
    jax.block_until_ready(y)

    # Sanity: abstract Layer forward is a no-op -> identity on the example.
    assert y.shape == x_host.shape and y.dtype == x_host.dtype
    assert np.allclose(np.asarray(y), x_host)

    print("KERNEL_OK")
</pallas_src>

<mosaic_0001>
module attributes {stable_mosaic.version = 11 : i64} {
  func.func @_noop_forward_kernel(%arg0: memref<2x4x16x16xf32, #tpu.memory_space<any>>, %arg1: memref<2x4x16x16xf32, #tpu.memory_space<any>>, %arg2: memref<1xi32, #tpu.memory_space<smem>>) attributes {dimension_semantics = [], scalar_prefetch = 0 : i64, scratch_operands = 1 : i64, tpu.core_type = #tpu.core_type<tc>} {
    %c1_i32 = arith.constant 1 : i32
    %c0 = arith.constant 0 : index
    %0 = memref.load %arg2[%c0] : memref<1xi32, #tpu.memory_space<smem>>
    memref.store %c1_i32, %arg2[%c0] : memref<1xi32, #tpu.memory_space<smem>>
    return
  }
}

</mosaic_0001>

<bundles_post_ra>
// kernel: layer_forward.1
= control target key start
LH: loop header
LB: loop body
LE: loop exit
PB: predicated region body
PF: predicated region fallthrough
CT: control target
= control target key end

     0   :  { %s18_s0 = inlined_call_operand.hbm [shape: f32[2,4,16,16], index: 0, kind: input, shape index: {}, may-alias: {0,1}]   ;;  %s19_s1 = inlined_call_operand.hbm [shape: f32[2,4,16,16], index: 1, kind: output, shape index: {}, may-alias: {0,1}]  }

</bundles_post_ra>
